<compile_context>
chip_gen: v6e
topology: v6e:2x2x1
jax: 0.10.0
libtpu: 0.0.40
codegen_flags: <defaults>
</compile_context>

<pallas_src>
import functools
import math

import numpy as np
import jax
import jax.numpy as jnp
from jax import lax
from jax.experimental import pallas as pl
from jax.experimental.pallas import tpu as pltpu

# ----------------------------------------------------------------------------
# Deterministic synthetic parameter construction (conv weight + folded BN)
# ----------------------------------------------------------------------------
_RS = np.random.RandomState(0)

BASE_WIDTH = 26
SCALE = 4
CHANNEL = 32


def conv_bn_params(cin, cout, ksize, bn=True, bias=False):
    kh, kw = (ksize, ksize) if isinstance(ksize, int) else ksize
    fan_in = cin * kh * kw
    w = (_RS.randn(kh * kw * cin, cout) * math.sqrt(2.0 / fan_in)).astype(np.float32)
    if bn:
        gamma = (1.0 + 0.1 * _RS.randn(cout)).astype(np.float32)
        beta = (0.1 * _RS.randn(cout)).astype(np.float32)
        mean = (0.1 * _RS.randn(cout)).astype(np.float32)
        var = np.abs(1.0 + 0.1 * _RS.randn(cout)).astype(np.float32)
        scale = gamma / np.sqrt(var + 1e-5)
        shift = beta - mean * scale
    else:
        scale = np.ones(cout, np.float32)
        shift = (0.1 * _RS.randn(cout)).astype(np.float32) if bias else np.zeros(cout, np.float32)
    # Fold BN scale into the weight columns; only the shift survives in the
    # kernel epilogue.  Weights are stored in bf16 for the MXU.
    w_folded = (w * scale[None, :]).astype(np.float32)
    return dict(
        w=jnp.asarray(w_folded).astype(jnp.bfloat16),
        shift=jnp.asarray(shift.reshape(1, cout)),
        kh=kh, kw=kw, cout=cout,
    )


# ----------------------------------------------------------------------------
# Fused, tiled matmul + BN-shift (+ gate / mul / add / ReLU) Pallas kernel
# ----------------------------------------------------------------------------
def _mm_kernel(*refs, has_gate, has_mul, has_add, relu):
    x_ref, w_ref, b_ref = refs[0], refs[1], refs[2]
    pos = 3
    g_ref = m_ref = a_ref = None
    if has_gate:
        g_ref = refs[pos]; pos += 1
    if has_mul:
        m_ref = refs[pos]; pos += 1
    if has_add:
        a_ref = refs[pos]; pos += 1
    o_ref, acc_ref = refs[pos], refs[pos + 1]

    k = pl.program_id(2)

    @pl.when(k == 0)
    def _():
        acc_ref[...] = jnp.zeros_like(acc_ref)

    x = x_ref[...]
    if has_gate:
        # reverse-attention gate applied to the matmul input rows
        gate = (1.0 - jax.nn.sigmoid(g_ref[...])).astype(x.dtype)
        x = x * gate
    acc_ref[...] += jnp.dot(x, w_ref[...], preferred_element_type=jnp.float32)

    @pl.when(k == pl.num_programs(2) - 1)
    def _():
        y = acc_ref[...] + b_ref[...]
        if has_mul:
            y = y * m_ref[...]
        if has_add:
            y = y + a_ref[...]
        if relu:
            y = jnp.maximum(y, 0.0)
        o_ref[...] = y


def _round_up(v, m):
    return ((v + m - 1) // m) * m


def _pick_tiles(M, K, N):
    # Modest tiles: bf16 operands + f32 acc + epilogue tiles stay well under
    # the scoped VMEM limit on v5e/v6e/v7x with double-buffering.
    tm = min(256, _round_up(M, 8))
    tk = min(512, _round_up(K, 128))
    tn = min(256, _round_up(N, 128))
    return tm, tk, tn


@functools.lru_cache(maxsize=None)
def _get_mm_call(Mp, Kp, Np, tm, tk, tn, has_gate, has_mul, has_add, relu):
    kern = functools.partial(_mm_kernel, has_gate=has_gate, has_mul=has_mul,
                             has_add=has_add, relu=relu)
    in_specs = [
        pl.BlockSpec((tm, tk), lambda i, j, k: (i, k)),
        pl.BlockSpec((tk, tn), lambda i, j, k: (k, j)),
        pl.BlockSpec((1, tn), lambda i, j, k: (0, j)),
    ]
    if has_gate:
        in_specs.append(pl.BlockSpec((tm, 1), lambda i, j, k: (i, 0)))
    if has_mul:
        in_specs.append(pl.BlockSpec((tm, tn), lambda i, j, k: (i, j)))
    if has_add:
        in_specs.append(pl.BlockSpec((tm, tn), lambda i, j, k: (i, j)))

    bytes_accessed = Mp * Kp * 2 + Kp * Np * 2 + Mp * Np * 4 + Np * 4
    if has_gate:
        bytes_accessed += Mp * 4
    if has_mul:
        bytes_accessed += Mp * Np * 4
    if has_add:
        bytes_accessed += Mp * Np * 4

    return pl.pallas_call(
        kern,
        out_shape=jax.ShapeDtypeStruct((Mp, Np), jnp.float32),
        grid_spec=pltpu.PrefetchScalarGridSpec(
            num_scalar_prefetch=0,
            grid=(Mp // tm, Np // tn, Kp // tk),
            in_specs=in_specs,
            out_specs=pl.BlockSpec((tm, tn), lambda i, j, k: (i, j)),
            scratch_shapes=[pltpu.VMEM((tm, tn), jnp.float32)],
        ),
        compiler_params=pltpu.CompilerParams(
            dimension_semantics=("parallel", "parallel", "arbitrary"),
            vmem_limit_bytes=48 * 1024 * 1024,
        ),
        cost_estimate=pl.CostEstimate(
            flops=2 * Mp * Np * Kp,
            transcendentals=Mp if has_gate else 0,
            bytes_accessed=bytes_accessed,
        ),
    )


def _pad2(a, rows, cols):
    r, c = a.shape
    if r == rows and c == cols:
        return a
    return jnp.pad(a, ((0, rows - r), (0, cols - c)))


def matmul_bn(x2d, w, shift, *, gate=None, mul=None, add=None, relu=False):
    M, K = x2d.shape
    _, N = w.shape
    tm, tk, tn = _pick_tiles(M, K, N)
    Mp, Kp, Np = _round_up(M, tm), _round_up(K, tk), _round_up(N, tn)

    args = [
        _pad2(x2d.astype(jnp.bfloat16), Mp, Kp),
        _pad2(w, Kp, Np),                       # already bf16, BN-scale folded
        _pad2(shift.astype(jnp.float32), 1, Np),
    ]
    if gate is not None:
        args.append(_pad2(gate.astype(jnp.float32), Mp, 1))
    if mul is not None:
        args.append(_pad2(mul.astype(jnp.float32), Mp, Np))
    if add is not None:
        args.append(_pad2(add.astype(jnp.float32), Mp, Np))

    call = _get_mm_call(Mp, Kp, Np, tm, tk, tn,
                        gate is not None, mul is not None, add is not None, relu)
    out = call(*args)
    if Mp != M or Np != N:
        out = out[:M, :N]
    return out


# ----------------------------------------------------------------------------
# Conv / pooling / resize helpers (glue around the Pallas kernel)
# ----------------------------------------------------------------------------
def _pair(v):
    return (v, v) if isinstance(v, int) else v


def conv_bn(x, p, stride=1, padding=0, dilation=1, relu=False,
            gate=None, mul=None, add=None):
    """Conv2d(bias=False)+folded BN (+gate/mul/add/ReLU fused epilogue), NHWC."""
    sh, sw = _pair(stride)
    ph, pw = _pair(padding)
    dh, dw = _pair(dilation)
    kh, kw = p['kh'], p['kw']
    N, H, W, C = x.shape
    xp = jnp.pad(x, ((0, 0), (ph, ph), (pw, pw), (0, 0))) if (ph or pw) else x
    Hp, Wp = H + 2 * ph, W + 2 * pw
    Ho = (Hp - dh * (kh - 1) - 1) // sh + 1
    Wo = (Wp - dw * (kw - 1) - 1) // sw + 1
    # TODO(synk): im2col is still materialized in HBM for k>1 convs; an
    # in-kernel tap loop would cut activation traffic by ~kh*kw.
    if kh == 1 and kw == 1 and sh == 1 and sw == 1:
        patches = xp
    else:
        cols = []
        for i in range(kh):
            for j in range(kw):
                sl = lax.slice(
                    xp,
                    (0, i * dh, j * dw, 0),
                    (N, i * dh + sh * (Ho - 1) + 1, j * dw + sw * (Wo - 1) + 1, C),
                    (1, sh, sw, 1),
                )
                cols.append(sl)
        patches = jnp.concatenate(cols, axis=-1) if len(cols) > 1 else cols[0]
    M = N * Ho * Wo
    K = kh * kw * C
    cout = p['cout']
    x2d = patches.reshape(M, K)
    g2d = gate.reshape(M, 1) if gate is not None else None
    m2d = mul.reshape(M, cout) if mul is not None else None
    a2d = add.reshape(M, cout) if add is not None else None
    out = matmul_bn(x2d, p['w'], p['shift'], gate=g2d, mul=m2d, add=a2d, relu=relu)
    return out.reshape(N, Ho, Wo, cout)


def maxpool3x3_s2(x):
    return lax.reduce_window(
        x, -float('inf'), lax.max, (1, 3, 3, 1), (1, 2, 2, 1),
        ((0, 0), (1, 1), (1, 1), (0, 0)))


def avgpool_valid(x, k, s):
    if k == 1 and s == 1:
        return x
    out = lax.reduce_window(x, 0.0, lax.add, (1, k, k, 1), (1, s, s, 1), 'VALID')
    return out / float(k * k)


def avgpool_incpad(x, k, s, p):
    out = lax.reduce_window(
        x, 0.0, lax.add, (1, k, k, 1), (1, s, s, 1),
        ((0, 0), (p, p), (p, p), (0, 0)))
    return out / float(k * k)


@functools.lru_cache(maxsize=None)
def _interp_matrix(in_size, out_size, align_corners):
    """PyTorch-style bilinear interpolation as a (out, in) matrix."""
    d = np.arange(out_size, dtype=np.float64)
    if align_corners:
        src = d * ((in_size - 1) / (out_size - 1)) if out_size > 1 else np.zeros_like(d)
    else:
        # TODO(synk): PyTorch recompute_scale_factor nuance ignored; uses in/out ratio.
        src = (d + 0.5) * (in_size / out_size) - 0.5
        src = np.maximum(src, 0.0)
    i0 = np.clip(np.floor(src).astype(np.int64), 0, in_size - 1)
    i1 = np.minimum(i0 + 1, in_size - 1)
    frac = (src - i0).astype(np.float32)
    A = np.zeros((out_size, in_size), np.float32)
    np.add.at(A, (np.arange(out_size), i0), 1.0 - frac)
    np.add.at(A, (np.arange(out_size), i1), frac)
    return jnp.asarray(A)


def bilinear_resize(x, out_h, out_w, align_corners):
    # Matrix form (two small matmuls) instead of gathers: MXU-friendly.
    N, H, W, C = x.shape
    if out_h == H and out_w == W:
        return x
    if out_h != H:
        Ah = _interp_matrix(H, out_h, align_corners)
        x = jnp.einsum('oh,nhwc->nowc', Ah, x)
    if out_w != W:
        Aw = _interp_matrix(W, out_w, align_corners)
        x = jnp.einsum('pw,nhwc->nhpc', Aw, x)
    return x


def interp_scale(x, scale, align_corners=False):
    N, H, W, C = x.shape
    return bilinear_resize(x, int(math.floor(H * scale)), int(math.floor(W * scale)),
                           align_corners)


# ----------------------------------------------------------------------------
# Res2Net-50 v1b (26w, 4s) building blocks
# ----------------------------------------------------------------------------
def make_block_params(inplanes, planes, stride, downsample, stype):
    width = int(math.floor(planes * (BASE_WIDTH / 64.0)))
    p = dict(
        stride=stride, stype=stype, width=width,
        conv1=conv_bn_params(inplanes, width * SCALE, 1),
        convs=[conv_bn_params(width, width, 3) for _ in range(SCALE - 1)],
        conv3=conv_bn_params(width * SCALE, planes * 4, 1),
    )
    if downsample:
        p['down'] = conv_bn_params(inplanes, planes * 4, 1)
    return p


def make_layer_params(inplanes, planes, blocks, stride):
    downsample = (stride != 1 or inplanes != planes * 4)
    params = [make_block_params(inplanes, planes, stride, downsample, 'stage')]
    for _ in range(1, blocks):
        params.append(make_block_params(planes * 4, planes, 1, False, 'normal'))
    return params


def bottle2neck(x, p):
    stride, stype, width = p['stride'], p['stype'], p['width']
    out = conv_bn(x, p['conv1'], relu=True)
    spx = [out[..., i * width:(i + 1) * width] for i in range(SCALE)]
    sp = None
    outs = []
    for i in range(SCALE - 1):
        if i == 0 or stype == 'stage':
            sp = spx[i]
        else:
            sp = sp + spx[i]
        sp = conv_bn(sp, p['convs'][i], stride=stride, padding=1, relu=True)
        outs.append(sp)
    if stype == 'normal':
        outs.append(spx[SCALE - 1])
    else:
        outs.append(avgpool_incpad(spx[SCALE - 1], 3, stride, 1))
    cat = jnp.concatenate(outs, axis=-1)
    if 'down' in p:
        residual = conv_bn(avgpool_valid(x, stride, stride), p['down'])
    else:
        residual = x
    # conv3 + BN + residual add + ReLU fused into one kernel epilogue
    return conv_bn(cat, p['conv3'], add=residual, relu=True)


def run_layer(x, layer_params):
    for bp in layer_params:
        x = bottle2neck(x, bp)
    return x


# ----------------------------------------------------------------------------
# RFB_modified / aggregation / reverse-attention heads
# ----------------------------------------------------------------------------
def make_rfb_params(cin, cout):
    return dict(
        b0=conv_bn_params(cin, cout, 1),
        b1=[conv_bn_params(cin, cout, 1), conv_bn_params(cout, cout, (1, 3)),
            conv_bn_params(cout, cout, (3, 1)), conv_bn_params(cout, cout, 3)],
        b2=[conv_bn_params(cin, cout, 1), conv_bn_params(cout, cout, (1, 5)),
            conv_bn_params(cout, cout, (5, 1)), conv_bn_params(cout, cout, 3)],
        b3=[conv_bn_params(cin, cout, 1), conv_bn_params(cout, cout, (1, 7)),
            conv_bn_params(cout, cout, (7, 1)), conv_bn_params(cout, cout, 3)],
        cat=conv_bn_params(4 * cout, cout, 3),
        res=conv_bn_params(cin, cout, 1),
    )


def rfb_forward(x, p):
    x0 = conv_bn(x, p['b0'])

    def branch(bl, r):
        y = conv_bn(x, bl[0])
        y = conv_bn(y, bl[1], padding=(0, r // 2))
        y = conv_bn(y, bl[2], padding=(r // 2, 0))
        y = conv_bn(y, bl[3], padding=r, dilation=r)
        return y

    x1 = branch(p['b1'], 3)
    x2 = branch(p['b2'], 5)
    x3 = branch(p['b3'], 7)
    res = conv_bn(x, p['res'])
    # cat conv + residual add + ReLU fused
    return conv_bn(jnp.concatenate([x0, x1, x2, x3], axis=-1), p['cat'],
                   padding=1, add=res, relu=True)


def make_agg_params(ch):
    return dict(
        up1=conv_bn_params(ch, ch, 3), up2=conv_bn_params(ch, ch, 3),
        up3=conv_bn_params(ch, ch, 3), up4=conv_bn_params(ch, ch, 3),
        up5=conv_bn_params(2 * ch, 2 * ch, 3),
        cat2=conv_bn_params(2 * ch, 2 * ch, 3),
        cat3=conv_bn_params(3 * ch, 3 * ch, 3),
        conv4=conv_bn_params(3 * ch, 3 * ch, 3),
        conv5=conv_bn_params(3 * ch, 1, 1, bn=False, bias=True),
    )


def agg_forward(x1, x2, x3, p):
    up = lambda t: bilinear_resize(t, t.shape[1] * 2, t.shape[2] * 2, True)
    x1_1 = x1
    # multiplicative merges fused into the conv epilogues
    x2_1 = conv_bn(up(x1), p['up1'], padding=1, mul=x2)
    x3_1 = conv_bn(up(x2), p['up3'], padding=1,
                   mul=conv_bn(up(up(x1)), p['up2'], padding=1) * x3)
    x2_2 = jnp.concatenate([x2_1, conv_bn(up(x1_1), p['up4'], padding=1)], axis=-1)
    x2_2 = conv_bn(x2_2, p['cat2'], padding=1)
    x3_2 = jnp.concatenate([x3_1, conv_bn(up(x2_2), p['up5'], padding=1)], axis=-1)
    x3_2 = conv_bn(x3_2, p['cat3'], padding=1)
    x = conv_bn(x3_2, p['conv4'], padding=1)
    return conv_bn(x, p['conv5'])


def make_ra4_params():
    return [conv_bn_params(2048, 256, 1),
            conv_bn_params(256, 256, 5), conv_bn_params(256, 256, 5),
            conv_bn_params(256, 256, 5), conv_bn_params(256, 1, 1)]


def ra4_forward(feat, crop, p):
    # (1 - sigmoid(crop)) * feat fused into the first 1x1 conv (gate epilogue)
    t = conv_bn(feat, p[0], gate=crop)
    t = conv_bn(t, p[1], padding=2, relu=True)
    t = conv_bn(t, p[2], padding=2, relu=True)
    t = conv_bn(t, p[3], padding=2, relu=True)
    return conv_bn(t, p[4])


def make_ra_small_params(cin):
    return [conv_bn_params(cin, 64, 1), conv_bn_params(64, 64, 3),
            conv_bn_params(64, 64, 3), conv_bn_params(64, 1, 3)]


def ra_small_forward(feat, crop, p):
    t = conv_bn(feat, p[0], gate=crop)
    t = conv_bn(t, p[1], padding=1, relu=True)
    t = conv_bn(t, p[2], padding=1, relu=True)
    return conv_bn(t, p[3], padding=1)


# ----------------------------------------------------------------------------
# Full PraNetv8 parameters + forward
# ----------------------------------------------------------------------------
def build_params():
    P = {}
    P['stem'] = [conv_bn_params(3, 32, 3), conv_bn_params(32, 32, 3),
                 conv_bn_params(32, 64, 3)]
    P['layer1'] = make_layer_params(64, 64, 3, 1)
    P['layer2'] = make_layer_params(256, 128, 4, 2)
    P['layer3'] = make_layer_params(512, 256, 6, 2)
    P['layer4'] = make_layer_params(1024, 512, 3, 2)
    P['new_layer2'] = make_layer_params(256, 128, 4, 2)
    P['new_layer3'] = make_layer_params(512, 256, 6, 2)
    P['new_layer4'] = make_layer_params(1024, 512, 3, 2)
    ch = CHANNEL
    P['rfb2'] = make_rfb_params(512, ch)
    P['rfb3'] = make_rfb_params(1024, ch)
    P['rfb4'] = make_rfb_params(2048, ch)
    P['new_rfb2'] = make_rfb_params(512, ch)
    P['new_rfb3'] = make_rfb_params(1024, ch)
    P['new_rfb4'] = make_rfb_params(2048, ch)
    P['agg1'] = make_agg_params(ch)
    P['agg2'] = make_agg_params(ch)
    P['ra4'] = make_ra4_params()
    P['new_ra4'] = make_ra4_params()
    P['ra3'] = make_ra_small_params(1024)
    P['new_ra3'] = make_ra_small_params(1024)
    P['ra2'] = make_ra_small_params(512)
    P['new_ra2'] = make_ra_small_params(512)
    P['new_ra1'] = make_ra_small_params(256)
    P['new_ra0'] = make_ra_small_params(64)
    return P


def pranet_forward(x_nchw, P):
    x = jnp.transpose(x_nchw, (0, 2, 3, 1)).astype(jnp.float32)   # -> NHWC

    # ---- backbone 1 ----
    h = conv_bn(x, P['stem'][0], stride=2, padding=1, relu=True)
    h = conv_bn(h, P['stem'][1], stride=1, padding=1, relu=True)
    h = conv_bn(h, P['stem'][2], stride=1, padding=1, relu=True)
    x0 = maxpool3x3_s2(h)
    x1 = run_layer(x0, P['layer1'])
    x2 = run_layer(x1, P['layer2'])
    x3 = run_layer(x2, P['layer3'])
    x4 = run_layer(x3, P['layer4'])

    x2_rfb = rfb_forward(x2, P['rfb2'])
    x3_rfb = rfb_forward(x3, P['rfb3'])
    x4_rfb = rfb_forward(x4, P['rfb4'])
    ra5_feat = agg_forward(x4_rfb, x3_rfb, x2_rfb, P['agg1'])
    lateral_map_5 = interp_scale(ra5_feat, 8)
    crop_4 = interp_scale(ra5_feat, 0.25)

    ra4_feat = ra4_forward(x4, crop_4, P['ra4'])
    t = ra4_feat + crop_4
    lateral_map_4 = interp_scale(t, 32)
    crop_3 = interp_scale(t, 2)

    ra3_feat = ra_small_forward(x3, crop_3, P['ra3'])
    t = ra3_feat + crop_3
    lateral_map_3 = interp_scale(t, 16)
    crop_2 = interp_scale(t, 2)

    ra2_feat = ra_small_forward(x2, crop_2, P['ra2'])
    t = ra2_feat + crop_2
    lateral_map_2 = interp_scale(t, 8)

    # ---- backbone 2 (1-channel map upsampled & expanded to 256 channels) ----
    new_in = interp_scale(t, 2)
    new_in = jnp.broadcast_to(new_in, new_in.shape[:3] + (256,))
    new_x2 = run_layer(new_in, P['new_layer2'])
    new_x3 = run_layer(new_x2, P['new_layer3'])
    new_x4 = run_layer(new_x3, P['new_layer4'])

    new_x2_rfb = rfb_forward(new_x2, P['new_rfb2'])
    new_x3_rfb = rfb_forward(new_x3, P['new_rfb3'])
    new_x4_rfb = rfb_forward(new_x4, P['new_rfb4'])
    new_ra5_feat = agg_forward(new_x4_rfb, new_x3_rfb, new_x2_rfb, P['agg2'])
    new_lateral_map_5 = interp_scale(new_ra5_feat, 8)
    new_crop_4 = interp_scale(new_ra5_feat, 0.25)

    new_ra4_feat = ra4_forward(new_x4, new_crop_4, P['new_ra4'])
    t = new_ra4_feat + new_crop_4
    new_lateral_map_4 = interp_scale(t, 32)
    new_crop_3 = interp_scale(t, 2)

    new_ra3_feat = ra_small_forward(new_x3, new_crop_3, P['new_ra3'])
    t = new_ra3_feat + new_crop_3
    new_lateral_map_3 = interp_scale(t, 16)
    new_crop_2 = interp_scale(t, 2)

    new_ra2_feat = ra_small_forward(new_x2, new_crop_2, P['new_ra2'])
    t = new_ra2_feat + new_crop_2
    new_lateral_map_2 = interp_scale(t, 8)
    new_crop_1 = interp_scale(t, 2)

    new_ra1_feat = ra_small_forward(x1, new_crop_1, P['new_ra1'])
    t = new_ra1_feat + new_crop_1
    new_lateral_map_1 = interp_scale(t, 4)
    new_crop_0 = t

    new_ra0_feat = ra_small_forward(x0, new_crop_0, P['new_ra0'])
    t = new_ra0_feat + new_crop_0
    new_lateral_map_0 = interp_scale(t, 4)

    to_nchw = lambda a: jnp.transpose(a, (0, 3, 1, 2))
    return tuple(to_nchw(a) for a in (
        lateral_map_5, lateral_map_4, lateral_map_3, lateral_map_2,
        new_lateral_map_5, new_lateral_map_4, new_lateral_map_3,
        new_lateral_map_2, new_lateral_map_1, new_lateral_map_0))


# ----------------------------------------------------------------------------
if __name__ == "__main__":
    params = build_params()
    key = jax.random.PRNGKey(0)
    # Small input consistent with the module (RGB image, /32-divisible spatial).
    x = jax.random.normal(key, (1, 3, 32, 32), dtype=jnp.float32)
    outs = pranet_forward(x, params)
    outs = jax.block_until_ready(outs)
    assert len(outs) == 10
    for o in outs:
        assert o.shape[0] == 1 and o.shape[1] == 1
        assert bool(jnp.all(jnp.isfinite(o)))
    print("KERNEL_OK")
</pallas_src>

<mosaic_0001>
module attributes {stable_mosaic.version = 11 : i64} {
  func.func @_mm_kernel(%arg0: i32, %arg1: i32, %arg2: i32, %arg3: memref<256x128xbf16, #tpu.memory_space<vmem>>, %arg4: memref<128x128xbf16, #tpu.memory_space<vmem>>, %arg5: memref<1x128xf32, #tpu.memory_space<vmem>>, %arg6: memref<256x128xf32, #tpu.memory_space<vmem>>, %arg7: memref<256x128xf32, #tpu.memory_space<vmem>>) attributes {dimension_semantics = [#tpu.dimension_semantics<parallel>, #tpu.dimension_semantics<parallel>, #tpu.dimension_semantics<arbitrary>], iteration_bounds = array<i64: 1, 1, 1>, scalar_prefetch = 0 : i64, scratch_operands = 1 : i64, tpu.core_type = #tpu.core_type<tc>, window_params = [{transform_indices = @transform_0, window_bounds = array<i64: 256, 128>}, {transform_indices = @transform_1, window_bounds = array<i64: 128, 128>}, {transform_indices = @transform_2, window_bounds = array<i64: 1, 128>}, {transform_indices = @transform_3, window_bounds = array<i64: 256, 128>}]} {
    %c0_i32 = arith.constant 0 : i32
    %0 = arith.cmpi eq, %arg2, %c0_i32 : i32
    %1 = arith.extui %0 : i1 to i32
    %c0_i32_0 = arith.constant 0 : i32
    %2 = arith.cmpi ne, %1, %c0_i32_0 : i32
    scf.if %2 {
      %cst_10 = arith.constant 0.000000e+00 : f32
      %12 = vector.broadcast %cst_10 : f32 to vector<256x128xf32>
      %c0_11 = arith.constant 0 : index
      %c0_12 = arith.constant 0 : index
      %13 = vector.load %arg7[%c0_11, %c0_12] : memref<256x128xf32, #tpu.memory_space<vmem>>, vector<256x128xf32>
      tpu.vector_store %arg7[%c0_11, %c0_12], %12 {strides = array<i32>} : memref<256x128xf32, #tpu.memory_space<vmem>>, vector<256x128xf32>,
    } else {
    }
    %c0 = arith.constant 0 : index
    %c0_1 = arith.constant 0 : index
    %3 = vector.load %arg3[%c0, %c0_1] : memref<256x128xbf16, #tpu.memory_space<vmem>>, vector<256x128xbf16>
    %c0_2 = arith.constant 0 : index
    %c0_3 = arith.constant 0 : index
    %4 = vector.load %arg7[%c0_2, %c0_3] : memref<256x128xf32, #tpu.memory_space<vmem>>, vector<256x128xf32>
    %c0_4 = arith.constant 0 : index
    %c0_5 = arith.constant 0 : index
    %5 = vector.load %arg4[%c0_4, %c0_5] : memref<128x128xbf16, #tpu.memory_space<vmem>>, vector<128x128xbf16>
    %cst = arith.constant dense<0.000000e+00> : vector<256x128xf32>
    %6 = tpu.matmul %3, %5, %cst {dimension_numbers = #tpu.dot_dimension_numbers<[1], [0], [0], [1], [0, 0, 1, 1], [], []>} : vector<256x128xbf16>, vector<128x128xbf16>, vector<256x128xf32> -> vector<256x128xf32>
    %7 = arith.addf %4, %6 : vector<256x128xf32>
    %c0_6 = arith.constant 0 : index
    %c0_7 = arith.constant 0 : index
    %8 = vector.load %arg7[%c0_6, %c0_7] : memref<256x128xf32, #tpu.memory_space<vmem>>, vector<256x128xf32>
    tpu.vector_store %arg7[%c0_6, %c0_7], %7 {strides = array<i32>} : memref<256x128xf32, #tpu.memory_space<vmem>>, vector<256x128xf32>,
    %c0_i32_8 = arith.constant 0 : i32
    %9 = arith.cmpi eq, %arg2, %c0_i32_8 : i32
    %10 = arith.extui %9 : i1 to i32
    %c0_i32_9 = arith.constant 0 : i32
    %11 = arith.cmpi ne, %10, %c0_i32_9 : i32
    scf.if %11 {
      %c0_10 = arith.constant 0 : index
      %c0_11 = arith.constant 0 : index
      %12 = vector.load %arg7[%c0_10, %c0_11] : memref<256x128xf32, #tpu.memory_space<vmem>>, vector<256x128xf32>
      %c0_12 = arith.constant 0 : index
      %c0_13 = arith.constant 0 : index
      %13 = vector.load %arg5[%c0_12, %c0_13] : memref<1x128xf32, #tpu.memory_space<vmem>>, vector<1x128xf32>
      %14 = vector.broadcast %13 : vector<1x128xf32> to vector<256x128xf32>
      %15 = arith.addf %12, %14 : vector<256x128xf32>
      %cst_14 = arith.constant 0.000000e+00 : f32
      %16 = vector.broadcast %cst_14 : f32 to vector<256x128xf32>
      %17 = arith.maximumf %15, %16 : vector<256x128xf32>
      %c0_15 = arith.constant 0 : index
      %c0_16 = arith.constant 0 : index
      %18 = vector.load %arg6[%c0_15, %c0_16] : memref<256x128xf32, #tpu.memory_space<vmem>>, vector<256x128xf32>
      tpu.vector_store %arg6[%c0_15, %c0_16], %17 {strides = array<i32>} : memref<256x128xf32, #tpu.memory_space<vmem>>, vector<256x128xf32>,
    } else {
    }
    return
  }
  func.func @transform_0(%arg0: i32, %arg1: i32, %arg2: i32) -> (i32, i32) {
    %c0_i32 = arith.constant 0 : i32
    return %arg0, %arg2 : i32, i32
  }
  func.func @transform_1(%arg0: i32, %arg1: i32, %arg2: i32) -> (i32, i32) {
    %c0_i32 = arith.constant 0 : i32
    return %arg2, %arg1 : i32, i32
  }
  func.func @transform_2(%arg0: i32, %arg1: i32, %arg2: i32) -> (i32, i32) {
    %c0_i32 = arith.constant 0 : i32
    %c0_i32_0 = arith.constant 0 : i32
    return %c0_i32, %arg1 : i32, i32
  }
  func.func @transform_3(%arg0: i32, %arg1: i32, %arg2: i32) -> (i32, i32) {
    %c0_i32 = arith.constant 0 : i32
    return %arg0, %arg1 : i32, i32
  }
}

</mosaic_0001>

<bundles_post_ra>
// kernel: tpu_custom_call.1
= control target key start
LH: loop header
LB: loop body
LE: loop exit
PB: predicated region body
PF: predicated region fallthrough
CT: control target
= control target key end

     0   :  { %8 = vsyncpa [#allocation4], 0  ;;  %s968_s0 = inlined_call_operand.hbm [shape: bf16[256,128], index: 0, kind: input, shape index: {}]   ;;  %s969_s1 = inlined_call_operand.hbm [shape: bf16[128,128], index: 1, kind: input, shape index: {}]   ;;  %s970_s2 = inlined_call_operand.vmem [shape: f32[1,128], index: 2, kind: input, shape index: {}]   ;;  %s971_s3 = inlined_call_operand.hbm [shape: f32[256,128], index: 3, kind: output, shape index: {}]  }
   0x1   :  { %9 = vsyncpa [#allocation7], 0 }
   0x2   :  { %10 = vsyncpa [#allocation5], 0  ;;  %s895_s12 = smov [#allocation3]  }
   0x3   :  { %s16_s13 = sshll.u32 %s895_s12, 4  ;;  %s17_s13 = int_to_ptr.vmem [resolvable:$true] %s16_s13 }
   0x4   :  { %s837_s14 = scalar_lea.vmem %s17_s13, 2048  ;;  %p842_p1 = scmp.lt.s32.totalorder %s17_s13, %s17_s13 }
   0x5   :  { %p838_p0 = scmp.ne.s32.totalorder %s17_s13, %s837_s14  ;;  %p843_p2 = scmp.lt.s32.totalorder %s837_s14, %s837_s14 }
   0x7   :  { %p844_p3 = por %p843_p2, %p842_p1 }
   0x9   :  { %p845_p4 = pnand %p844_p3, %p838_p0 }
   0xb   :  { %848 = shalt.err (!%p845_p4)
}
   0xc   :  { %s896_s15 = smov 64   ;;  %s897_s16 = smov 4  }
   0xd   :  { %22 = dma.hbm_to_vmem [thread:$0]  %s968_s0, 2048, %s17_s13, [#allocation4], %s896_s15, %s896_s15, %s897_s16  }
   0xe   :  { %s898_s19 = smov [#allocation6]  }
   0xf   :  { %s28_s20 = sshll.u32 %s898_s19, 4  ;;  %s29_s20 = int_to_ptr.vmem [resolvable:$true] %s28_s20 }
  0x10   :  { %s857_s21 = scalar_lea.vmem %s29_s20, 1024  ;;  %p862_p6 = scmp.lt.s32.totalorder %s29_s20, %s29_s20 }
  0x11   :  { %p858_p5 = scmp.ne.s32.totalorder %s29_s20, %s857_s21  ;;  %p863_p7 = scmp.lt.s32.totalorder %s857_s21, %s857_s21 }
  0x13   :  { %p864_p8 = por %p863_p7, %p862_p6 }
  0x15   :  { %p865_p9 = pnand %p864_p8, %p858_p5 }
  0x17   :  { %868 = shalt.err (!%p865_p9)
}
  0x18   :  { %34 = dma.hbm_to_vmem [thread:$0]  %s969_s1, 1024, %s29_s20, [#allocation7], %s896_s15, %s896_s15, %s897_s16  }
  0x19   :  { %889 = dma.done.wait [#allocation4], 2048  }
  0x1a   :  { %890 = vsyncadd [#allocation4], 4294965248 }
  0x1b   :  { %891 = dma.done.wait [#allocation7], 1024  }
  0x1c   :  { %892 = vsyncadd [#allocation7], 4294966272  ;;  %v805_v0 = vld [vmem:[#allocation6 + $0x38] sm:$0xff]   ;;  %v806_v1 = vld [vmem:[#allocation6 + $0x30] sm:$0xff]  }
  0x1d   :  { %734 = vmatprep.subr.bf16.mxu0 %v805_v0  ;;  %782 = vmatprep.subr.bf16.mxu1 %v805_v0  ;;  %v807_v2 = vld [vmem:[#allocation6 + $0x28] sm:$0xff]   ;;  %v808_v3 = vld [vmem:[#allocation6 + $0x20] sm:$0xff]   ;;  %v809_v6 = vld [vmem:[#allocation6 + $0x18] sm:$0xff]  }
  0x1e   :  { %735 = vmatpush3.bf16.msra.mxu0 %v805_v0  ;;  %790 = vmatpush3.bf16.msra.mxu1 %v805_v0  ;;  %v813_v4 = vld [vmem:[#allocation3] sm:$0xff]   ;;  %v810_v7 = vld [vmem:[#allocation6 + $0x10] sm:$0xff]   ;;  %v811_v8 = vld [vmem:[#allocation6 + $0x8] sm:$0xff]  }
  0x1f   :  { %736 = vmatprep.subr.bf16.mxu0 %v806_v1  ;;  %783 = vmatprep.subr.bf16.mxu1 %v806_v1  ;;  %v814_v5 = vld [vmem:[#allocation3 + $0x40] sm:$0xff]   ;;  %v815_v10 = vld [vmem:[#allocation3 + $0x8] sm:$0xff]   ;;  %v817_v12 = vld [vmem:[#allocation3 + $0x10] sm:$0xff]  }
  0x20   :  { %750 = vmatprep.mubr.bf16.mxu0 %v813_v4  ;;  %766 = vmatprep.mubr.bf16.mxu1 %v814_v5  ;;  %v812_v9 = vld [vmem:[#allocation6] sm:$0xff]   ;;  %v816_v11 = vld [vmem:[#allocation3 + $0x48] sm:$0xff]   ;;  %v818_v13 = vld [vmem:[#allocation3 + $0x50] sm:$0xff]  }
  0x21   :  { %v819_v14 = vld [vmem:[#allocation3 + $0x18] sm:$0xff]   ;;  %v821_v16 = vld [vmem:[#allocation3 + $0x20] sm:$0xff]   ;;  %v823_v18 = vld [vmem:[#allocation3 + $0x28] sm:$0xff]  }
  0x22   :  { %737 = vmatpush3.bf16.msra.mxu0 %v806_v1  ;;  %791 = vmatpush3.bf16.msra.mxu1 %v806_v1  ;;  %v820_v15 = vld [vmem:[#allocation3 + $0x58] sm:$0xff]   ;;  %v822_v17 = vld [vmem:[#allocation3 + $0x60] sm:$0xff]   ;;  %v824_v19 = vld [vmem:[#allocation3 + $0x68] sm:$0xff]  }
  0x23   :  { %738 = vmatprep.subr.bf16.mxu0 %v807_v2  ;;  %784 = vmatprep.subr.bf16.mxu1 %v807_v2  ;;  %v825_v20 = vld [vmem:[#allocation3 + $0x30] sm:$0xff]   ;;  %v827_v22 = vld [vmem:[#allocation3 + $0x38] sm:$0xff]   ;;  %v931_v24 = vld [vmem:[%s970_s2] ss:$0 sm:$0xff]  ;;  %s899_s2 = smov [#allocation8]  }
  0x24   :  { %v826_v21 = vld [vmem:[#allocation3 + $0x70] sm:$0xff]   ;;  %v828_v23 = vld [vmem:[#allocation3 + $0x78] sm:$0xff]   ;;  %s672_s24 = sshll.u32 %s899_s2, 4  ;;  %s673_s24 = int_to_ptr.vmem [resolvable:$true] %s672_s24 }
  0x25   :  { %s869_s25 = scalar_lea.vmem %s673_s24, 4096  ;;  %p874_p11 = scmp.lt.s32.totalorder %s673_s24, %s673_s24 }
  0x26   :  { %739 = vmatpush3.bf16.msra.mxu0 %v807_v2  ;;  %792 = vmatpush3.bf16.msra.mxu1 %v807_v2  ;;  %p870_p10 = scmp.ne.s32.totalorder %s673_s24, %s869_s25  ;;  %p875_p12 = scmp.lt.s32.totalorder %s869_s25, %s869_s25 }
  0x27   :  { %740 = vmatprep.subr.bf16.mxu0 %v808_v3  ;;  %785 = vmatprep.subr.bf16.mxu1 %v808_v3 }
  0x28   :  { %p876_p13 = por %p875_p12, %p874_p11 }
  0x2a   :  { %741 = vmatpush3.bf16.msra.mxu0 %v808_v3  ;;  %793 = vmatpush3.bf16.msra.mxu1 %v808_v3  ;;  %p877_p0 = pnand %p876_p13, %p870_p10 }
  0x2b   :  { %742 = vmatprep.subr.bf16.mxu0 %v809_v6  ;;  %786 = vmatprep.subr.bf16.mxu1 %v809_v6 }
  0x2e   :  { %743 = vmatpush3.bf16.msra.mxu0 %v809_v6  ;;  %794 = vmatpush3.bf16.msra.mxu1 %v809_v6 }
  0x2f   :  { %744 = vmatprep.subr.bf16.mxu0 %v810_v7  ;;  %787 = vmatprep.subr.bf16.mxu1 %v810_v7 }
  0x32   :  { %745 = vmatpush3.bf16.msra.mxu0 %v810_v7  ;;  %795 = vmatpush3.bf16.msra.mxu1 %v810_v7 }
  0x33   :  { %746 = vmatprep.subr.bf16.mxu0 %v811_v8  ;;  %788 = vmatprep.subr.bf16.mxu1 %v811_v8 }
  0x36   :  { %747 = vmatpush3.bf16.msra.mxu0 %v811_v8  ;;  %796 = vmatpush3.bf16.msra.mxu1 %v811_v8 }
  0x37   :  { %748 = vmatprep.subr.bf16.mxu0 %v812_v9  ;;  %789 = vmatprep.subr.bf16.mxu1 %v812_v9 }
  0x3a   :  { %749 = vmatpush3.bf16.msra.mxu0 %v812_v9  ;;  %797 = vmatpush3.bf16.msra.mxu1 %v812_v9 }
  0x3d   :  { %751 = vmatmul.mubr.bf16.vlgmr.msra.gmra.mxu0 %v815_v10  ;;  %767 = vmatmul.mubr.bf16.vlgmr.msra.gmra.mxu1 %v816_v11 }
  0x3e   :  { %754 = vmatprep.mubr.bf16.mxu0 %v817_v12  ;;  %770 = vmatprep.mubr.bf16.mxu1 %v818_v13 }
  0x45   :  { %755 = vmatmul.mubr.bf16.gmra.mxu0 %v819_v14  ;;  %771 = vmatmul.mubr.bf16.gmra.mxu1 %v820_v15 }
  0x46   :  { %758 = vmatprep.mubr.bf16.mxu0 %v821_v16  ;;  %774 = vmatprep.mubr.bf16.mxu1 %v822_v17 }
  0x4d   :  { %759 = vmatmul.mubr.bf16.gmra.mxu0 %v823_v18  ;;  %775 = vmatmul.mubr.bf16.gmra.mxu1 %v824_v19 }
  0x4e   :  { %762 = vmatprep.mubr.bf16.mxu0 %v825_v20  ;;  %778 = vmatprep.mubr.bf16.mxu1 %v826_v21 }
  0x55   :  { %763 = vmatmul.mubr.bf16.gmra.mxu0 %v827_v22  ;;  %779 = vmatmul.mubr.bf16.gmra.mxu1 %v828_v23 }
  0xfd   :  { %v752_v25 = vpop.f32.mrf.mxu0  ;;  %v768_v26 = vpop.f32.mrf.mxu1 }
  0xfe   :  { %v573_v27 = vadd.f32 %v752_v25, %v931_v24  ;;  %v589_v28 = vadd.f32 %v768_v26, %v931_v24 }
  0xff   :  { %v338_v29 = vpop.f32.mrf.mxu0  ;;  %v402_v30 = vpop.f32.mrf.mxu1 }
 0x100   :  { %v605_v31 = vmax.f32 %v573_v27, 0.0  ;;  %v621_v32 = vmax.f32 %v589_v28, 0.0  ;;  %v571_v33 = vadd.f32 %v931_v24, %v338_v29  ;;  %v587_v34 = vadd.f32 %v931_v24, %v402_v30 }
 0x101   :  { %v753_v35 = vpop.f32.mrf.mxu0  ;;  %v769_v36 = vpop.f32.mrf.mxu1 }
 0x102   :  { %637 = vst [vmem:[#allocation8 + $0x10] sm:$0xff] %v605_v31  ;;  %653 = vst [vmem:[#allocation8 + $0x90] sm:$0xff] %v621_v32  ;;  %v603_v37 = vmax.f32 %v571_v33, 0.0  ;;  %v619_v38 = vmax.f32 %v587_v34, 0.0  ;;  %v574_v39 = vadd.f32 %v753_v35, %v931_v24  ;;  %v590_v40 = vadd.f32 %v769_v36, %v931_v24 }
 0x103   :  { %v341_v41 = vpop.f32.mrf.mxu0  ;;  %v405_v42 = vpop.f32.mrf.mxu1 }
 0x104   :  { %635 = vst [vmem:[#allocation8] sm:$0xff] %v603_v37  ;;  %651 = vst [vmem:[#allocation8 + $0x80] sm:$0xff] %v619_v38  ;;  %v606_v43 = vmax.f32 %v574_v39, 0.0  ;;  %v622_v44 = vmax.f32 %v590_v40, 0.0  ;;  %v572_v45 = vadd.f32 %v931_v24, %v341_v41  ;;  %v588_v46 = vadd.f32 %v931_v24, %v405_v42 }
 0x105   :  { %v756_v47 = vpop.f32.mrf.mxu0  ;;  %v772_v48 = vpop.f32.mrf.mxu1 }
 0x106   :  { %638 = vst [vmem:[#allocation8 + $0x18] sm:$0xff] %v606_v43  ;;  %654 = vst [vmem:[#allocation8 + $0x98] sm:$0xff] %v622_v44  ;;  %v604_v49 = vmax.f32 %v572_v45, 0.0  ;;  %v620_v50 = vmax.f32 %v588_v46, 0.0  ;;  %v577_v51 = vadd.f32 %v756_v47, %v931_v24  ;;  %v593_v52 = vadd.f32 %v772_v48, %v931_v24 }
 0x107   :  { %v354_v53 = vpop.f32.mrf.mxu0  ;;  %v418_v54 = vpop.f32.mrf.mxu1 }
 0x108   :  { %636 = vst [vmem:[#allocation8 + $0x8] sm:$0xff] %v604_v49  ;;  %652 = vst [vmem:[#allocation8 + $0x88] sm:$0xff] %v620_v50  ;;  %v609_v55 = vmax.f32 %v577_v51, 0.0  ;;  %v625_v56 = vmax.f32 %v593_v52, 0.0  ;;  %v575_v57 = vadd.f32 %v931_v24, %v354_v53  ;;  %v591_v58 = vadd.f32 %v931_v24, %v418_v54 }
 0x109   :  { %v757_v59 = vpop.f32.mrf.mxu0  ;;  %v773_v60 = vpop.f32.mrf.mxu1 }
 0x10a   :  { %641 = vst [vmem:[#allocation8 + $0x30] sm:$0xff] %v609_v55  ;;  %657 = vst [vmem:[#allocation8 + $0xb0] sm:$0xff] %v625_v56  ;;  %v607_v61 = vmax.f32 %v575_v57, 0.0  ;;  %v623_v62 = vmax.f32 %v591_v58, 0.0  ;;  %v578_v63 = vadd.f32 %v757_v59, %v931_v24  ;;  %v594_v0 = vadd.f32 %v773_v60, %v931_v24 }
 0x10b   :  { %v357_v1 = vpop.f32.mrf.mxu0  ;;  %v421_v2 = vpop.f32.mrf.mxu1 }
 0x10c   :  { %639 = vst [vmem:[#allocation8 + $0x20] sm:$0xff] %v607_v61  ;;  %655 = vst [vmem:[#allocation8 + $0xa0] sm:$0xff] %v623_v62  ;;  %v610_v3 = vmax.f32 %v578_v63, 0.0  ;;  %v626_v4 = vmax.f32 %v594_v0, 0.0  ;;  %v576_v5 = vadd.f32 %v931_v24, %v357_v1  ;;  %v592_v6 = vadd.f32 %v931_v24, %v421_v2 }
 0x10d   :  { %v760_v7 = vpop.f32.mrf.mxu0  ;;  %v776_v8 = vpop.f32.mrf.mxu1 }
 0x10e   :  { %642 = vst [vmem:[#allocation8 + $0x38] sm:$0xff] %v610_v3  ;;  %658 = vst [vmem:[#allocation8 + $0xb8] sm:$0xff] %v626_v4  ;;  %v608_v9 = vmax.f32 %v576_v5, 0.0  ;;  %v624_v10 = vmax.f32 %v592_v6, 0.0  ;;  %v581_v11 = vadd.f32 %v760_v7, %v931_v24  ;;  %v597_v12 = vadd.f32 %v776_v8, %v931_v24 }
 0x10f   :  { %v370_v13 = vpop.f32.mrf.mxu0  ;;  %v434_v14 = vpop.f32.mrf.mxu1 }
 0x110   :  { %640 = vst [vmem:[#allocation8 + $0x28] sm:$0xff] %v608_v9  ;;  %656 = vst [vmem:[#allocation8 + $0xa8] sm:$0xff] %v624_v10  ;;  %v613_v15 = vmax.f32 %v581_v11, 0.0  ;;  %v629_v16 = vmax.f32 %v597_v12, 0.0  ;;  %v579_v17 = vadd.f32 %v931_v24, %v370_v13  ;;  %v595_v18 = vadd.f32 %v931_v24, %v434_v14 }
 0x111   :  { %v761_v19 = vpop.f32.mrf.mxu0  ;;  %v777_v20 = vpop.f32.mrf.mxu1 }
 0x112   :  { %645 = vst [vmem:[#allocation8 + $0x50] sm:$0xff] %v613_v15  ;;  %661 = vst [vmem:[#allocation8 + $0xd0] sm:$0xff] %v629_v16  ;;  %v611_v21 = vmax.f32 %v579_v17, 0.0  ;;  %v627_v22 = vmax.f32 %v595_v18, 0.0  ;;  %v582_v23 = vadd.f32 %v761_v19, %v931_v24  ;;  %v598_v25 = vadd.f32 %v777_v20, %v931_v24 }
 0x113   :  { %v373_v26 = vpop.f32.mrf.mxu0  ;;  %v437_v27 = vpop.f32.mrf.mxu1 }
 0x114   :  { %643 = vst [vmem:[#allocation8 + $0x40] sm:$0xff] %v611_v21  ;;  %659 = vst [vmem:[#allocation8 + $0xc0] sm:$0xff] %v627_v22  ;;  %v614_v28 = vmax.f32 %v582_v23, 0.0  ;;  %v630_v29 = vmax.f32 %v598_v25, 0.0  ;;  %v580_v30 = vadd.f32 %v931_v24, %v373_v26  ;;  %v596_v31 = vadd.f32 %v931_v24, %v437_v27 }
 0x115   :  { %v764_v32 = vpop.f32.mrf.mxu0  ;;  %v780_v33 = vpop.f32.mrf.mxu1 }
 0x116   :  { %646 = vst [vmem:[#allocation8 + $0x58] sm:$0xff] %v614_v28  ;;  %662 = vst [vmem:[#allocation8 + $0xd8] sm:$0xff] %v630_v29  ;;  %v612_v34 = vmax.f32 %v580_v30, 0.0  ;;  %v628_v35 = vmax.f32 %v596_v31, 0.0  ;;  %v585_v36 = vadd.f32 %v764_v32, %v931_v24  ;;  %v601_v37 = vadd.f32 %v780_v33, %v931_v24 }
 0x117   :  { %v386_v38 = vpop.f32.mrf.mxu0  ;;  %v450_v39 = vpop.f32.mrf.mxu1 }
 0x118   :  { %644 = vst [vmem:[#allocation8 + $0x48] sm:$0xff] %v612_v34  ;;  %660 = vst [vmem:[#allocation8 + $0xc8] sm:$0xff] %v628_v35  ;;  %v617_v40 = vmax.f32 %v585_v36, 0.0  ;;  %v633_v41 = vmax.f32 %v601_v37, 0.0  ;;  %v583_v42 = vadd.f32 %v931_v24, %v386_v38  ;;  %v599_v43 = vadd.f32 %v931_v24, %v450_v39 }
 0x119   :  { %v765_v44 = vpop.f32.mrf.mxu0  ;;  %v781_v45 = vpop.f32.mrf.mxu1 }
 0x11a   :  { %649 = vst [vmem:[#allocation8 + $0x70] sm:$0xff] %v617_v40  ;;  %665 = vst [vmem:[#allocation8 + $0xf0] sm:$0xff] %v633_v41  ;;  %v615_v46 = vmax.f32 %v583_v42, 0.0  ;;  %v631_v47 = vmax.f32 %v599_v43, 0.0  ;;  %v586_v48 = vadd.f32 %v765_v44, %v931_v24  ;;  %v602_v49 = vadd.f32 %v781_v45, %v931_v24 }
 0x11b   :  { %v389_v50 = vpop.f32.mrf.mxu0  ;;  %v453_v51 = vpop.f32.mrf.mxu1 }
 0x11c   :  { %647 = vst [vmem:[#allocation8 + $0x60] sm:$0xff] %v615_v46  ;;  %663 = vst [vmem:[#allocation8 + $0xe0] sm:$0xff] %v631_v47  ;;  %v618_v52 = vmax.f32 %v586_v48, 0.0  ;;  %v634_v53 = vmax.f32 %v602_v49, 0.0  ;;  %v584_v54 = vadd.f32 %v931_v24, %v389_v50  ;;  %v600_v55 = vadd.f32 %v931_v24, %v453_v51 }
 0x11e   :  { %650 = vst [vmem:[#allocation8 + $0x78] sm:$0xff] %v618_v52  ;;  %666 = vst [vmem:[#allocation8 + $0xf8] sm:$0xff] %v634_v53  ;;  %v616_v56 = vmax.f32 %v584_v54, 0.0  ;;  %v632_v57 = vmax.f32 %v600_v55, 0.0 }
 0x120   :  { %648 = vst [vmem:[#allocation8 + $0x68] sm:$0xff] %v616_v56  ;;  %664 = vst [vmem:[#allocation8 + $0xe8] sm:$0xff] %v632_v57 }
 0x121   :  { %880 = shalt.err (!%p877_p0)
}
 0x122   :  { %s900_s26 = smov 128   ;;  %s901_s27 = smov 8  }
 0x123   :  { %678 = dma.vmem_to_hbm [thread:$0]  %s673_s24, 4096, %s971_s3, [#allocation5], %s900_s26, %s900_s26, %s901_s27  }
 0x124   :  { %893 = dma.done.wait [#allocation5], 4096  }
 0x125   :  { %894 = vsyncadd [#allocation5], 4294963200 }
 0x126   :  { %682 = vsyncpa [#allocation4], 1 }
 0x127   :  { %683 = vsyncpa [#allocation7], 1 }
 0x128   :  { %684 = vsyncpa [#allocation5], 1 }

</bundles_post_ra>
